<compile_context>
chip_gen: v6e
topology: v6e:2x2x1
jax: 0.10.0
libtpu: 0.0.40
codegen_flags: <defaults>
</compile_context>

<pallas_src>
import functools

import jax
import jax.numpy as jnp
from jax.experimental import pallas as pl
from jax.experimental.pallas import tpu as pltpu


def _critic_kernel(x_ref, w1_ref, b1_ref, w2_ref, b2_ref, w3_ref, b3_ref, o_ref):
    # x_ref: [D_in, tile_b]  (batch on lanes)
    # w1:    [H, D_in]   b1: [H, 1]
    # w2:    [H, H]      b2: [H, 1]
    # w3:    [H, 1]      b3: [1, 1]
    x = x_ref[...]
    h1 = jnp.dot(w1_ref[...], x, preferred_element_type=jnp.float32) + b1_ref[...]
    h1 = jnp.maximum(h1, 0.0)                                   # [H, tile_b]
    h2 = jnp.dot(w2_ref[...], h1, preferred_element_type=jnp.float32) + b2_ref[...]
    h2 = jnp.maximum(h2, 0.0)                                   # [H, tile_b]
    # fc3 has a single output feature: VPU multiply + XLU sublane-reduce
    # (avoids an N=1 MXU matmul that would waste 127/128 output lanes).
    q = jnp.sum(h2 * w3_ref[...], axis=0, keepdims=True) + b3_ref[...]  # [1, tile_b]
    o_ref[...] = q.astype(o_ref.dtype)


@functools.partial(jax.jit, static_argnames=("tile_b",))
def critic_forward(x, w1, b1, w2, b2, w3, b3, *, tile_b=512):
    """x: [B, D_in].
    w1: [H, D_in], w2: [H, H]   (PyTorch nn.Linear [out, in] layout, used as-is)
    w3: [H, 1]  (fc3.weight.T), b1/b2: [H, 1], b3: [1, 1].
    tile_b must be a multiple of 128 (lane-dense batch tile)."""
    B, D_in = x.shape
    H = w1.shape[0]
    assert tile_b % 128 == 0, "tile_b must be a multiple of 128 (lane axis)"

    # Pad batch up to a multiple of tile_b (padded rows are zeros, sliced off later).
    num_tiles = pl.cdiv(B, tile_b)
    B_pad = num_tiles * tile_b

    # One-time transpose: batch onto the lane axis.
    x_t = x.T                                    # [D_in, B]
    if B_pad != B:
        x_t = jnp.pad(x_t, ((0, 0), (0, B_pad - B)))

    full = lambda shape: pl.BlockSpec(shape, lambda i: (0, 0))

    out = pl.pallas_call(
        _critic_kernel,
        out_shape=jax.ShapeDtypeStruct((1, B_pad), x.dtype),
        grid_spec=pltpu.PrefetchScalarGridSpec(
            num_scalar_prefetch=0,
            grid=(num_tiles,),
            in_specs=[
                pl.BlockSpec((D_in, tile_b), lambda i: (0, i)),  # x tile (streams)
                full((H, D_in)),   # w1 (VMEM-resident)
                full((H, 1)),      # b1
                full((H, H)),      # w2
                full((H, 1)),      # b2
                full((H, 1)),      # w3 (as a column for the reduce)
                full((1, 1)),      # b3
            ],
            out_specs=pl.BlockSpec((1, tile_b), lambda i: (0, i)),  # lane-dense store
        ),
        compiler_params=pltpu.CompilerParams(
            dimension_semantics=("parallel",),       # megacore-shardable on v7x
            vmem_limit_bytes=32 * 1024 * 1024,       # explicit; safe on v7x's 64 MiB VMEM
        ),
    )(x_t, w1, b1, w2, b2, w3, b3)

    # [1, B_pad] -> [B, 1]
    return out[0, :B].reshape(B, 1)


def init_linear(key, fan_in, fan_out):
    """PyTorch nn.Linear default init: U(-1/sqrt(fan_in), 1/sqrt(fan_in))."""
    kw, kb = jax.random.split(key)
    bound = 1.0 / jnp.sqrt(float(fan_in))
    # PyTorch weight layout is [out, in]; kept as-is (the kernel uses it directly).
    w = jax.random.uniform(kw, (fan_out, fan_in), jnp.float32, -bound, bound)
    b = jax.random.uniform(kb, (fan_out,), jnp.float32, -bound, bound)
    return w, b


if __name__ == "__main__":
    # Small shapes: batch=8, input_shape=32, critic_dim=64.
    B, INPUT_SHAPE, CRITIC_DIM = 8, 32, 64

    key = jax.random.PRNGKey(0)
    kx, k1, k2, k3 = jax.random.split(key, 4)

    x = jax.random.normal(kx, (B, INPUT_SHAPE), jnp.float32)

    w1_t, b1 = init_linear(k1, INPUT_SHAPE, CRITIC_DIM)   # fc1: [H, D_in]
    w2_t, b2 = init_linear(k2, CRITIC_DIM, CRITIC_DIM)    # fc2: [H, H]
    w3_t, b3 = init_linear(k3, CRITIC_DIM, 1)             # fc3: [1, H]

    # Glue (outside the kernel): fc3 weight as a column, biases as columns.
    w3_col = w3_t.T                 # [H, 1]
    b1c = b1[:, None]               # [H, 1]
    b2c = b2[:, None]               # [H, 1]
    b3c = b3[:, None]               # [1, 1]

    # tile_b=128: the whole (padded) batch runs in a single lane-dense grid step.
    # TODO(synk): cast x/w to bf16 on v6e/v7x for MXU-native throughput (loosen tolerance).
    q = critic_forward(x, w1_t, b1c, w2_t, b2c, w3_col, b3c, tile_b=128)
    q = jax.block_until_ready(q)

    # Reference check (plain JAX, mirrors PyTorch semantics: x @ W.T + b).
    h1 = jnp.maximum(x @ w1_t.T + b1, 0.0)
    h2 = jnp.maximum(h1 @ w2_t.T + b2, 0.0)
    q_ref = h2 @ w3_t.T + b3

    assert q.shape == (B, 1)
    assert jnp.allclose(q, q_ref, atol=1e-5, rtol=1e-5), "mismatch vs reference"

    print("KERNEL_OK")
</pallas_src>

<mosaic_0001>
module attributes {stable_mosaic.version = 11 : i64} {
  func.func @_critic_kernel(%arg0: i32, %arg1: memref<32x128xf32, #tpu.memory_space<vmem>>, %arg2: memref<64x32xf32, #tpu.memory_space<vmem>>, %arg3: memref<64x1xf32, #tpu.memory_space<vmem>>, %arg4: memref<64x64xf32, #tpu.memory_space<vmem>>, %arg5: memref<64x1xf32, #tpu.memory_space<vmem>>, %arg6: memref<64x1xf32, #tpu.memory_space<vmem>>, %arg7: memref<1x1xf32, #tpu.memory_space<vmem>>, %arg8: memref<1x128xf32, #tpu.memory_space<vmem>>) attributes {dimension_semantics = [#tpu.dimension_semantics<parallel>], iteration_bounds = array<i64: 1>, scalar_prefetch = 0 : i64, scratch_operands = 0 : i64, tpu.core_type = #tpu.core_type<tc>, window_params = [{transform_indices = @transform_0, window_bounds = array<i64: 32, 128>}, {pipeline_mode = #tpu.pipeline_mode<synchronous>, transform_indices = @transform_1, window_bounds = array<i64: 64, 32>}, {pipeline_mode = #tpu.pipeline_mode<synchronous>, transform_indices = @transform_2, window_bounds = array<i64: 64, 1>}, {pipeline_mode = #tpu.pipeline_mode<synchronous>, transform_indices = @transform_3, window_bounds = array<i64: 64, 64>}, {pipeline_mode = #tpu.pipeline_mode<synchronous>, transform_indices = @transform_4, window_bounds = array<i64: 64, 1>}, {pipeline_mode = #tpu.pipeline_mode<synchronous>, transform_indices = @transform_5, window_bounds = array<i64: 64, 1>}, {pipeline_mode = #tpu.pipeline_mode<synchronous>, transform_indices = @transform_6, window_bounds = array<i64: 1, 1>}, {transform_indices = @transform_7, window_bounds = array<i64: 1, 128>}]} {
    %c0 = arith.constant 0 : index
    %c0_0 = arith.constant 0 : index
    %0 = vector.load %arg1[%c0, %c0_0] : memref<32x128xf32, #tpu.memory_space<vmem>>, vector<32x128xf32>
    %c0_1 = arith.constant 0 : index
    %c0_2 = arith.constant 0 : index
    %1 = vector.load %arg2[%c0_1, %c0_2] : memref<64x32xf32, #tpu.memory_space<vmem>>, vector<64x32xf32>
    %cst = arith.constant dense<0.000000e+00> : vector<64x128xf32>
    %2 = tpu.matmul %1, %0, %cst {dimension_numbers = #tpu.dot_dimension_numbers<[1], [0], [0], [1], [0, 0, 1, 1], [], []>} : vector<64x32xf32>, vector<32x128xf32>, vector<64x128xf32> -> vector<64x128xf32>
    %c0_3 = arith.constant 0 : index
    %c0_4 = arith.constant 0 : index
    %3 = vector.load %arg3[%c0_3, %c0_4] : memref<64x1xf32, #tpu.memory_space<vmem>>, vector<64x1xf32>
    %4 = vector.broadcast %3 : vector<64x1xf32> to vector<64x128xf32>
    %5 = arith.addf %2, %4 : vector<64x128xf32>
    %cst_5 = arith.constant 0.000000e+00 : f32
    %6 = vector.broadcast %cst_5 : f32 to vector<64x128xf32>
    %7 = arith.maximumf %5, %6 : vector<64x128xf32>
    %c0_6 = arith.constant 0 : index
    %c0_7 = arith.constant 0 : index
    %8 = vector.load %arg4[%c0_6, %c0_7] : memref<64x64xf32, #tpu.memory_space<vmem>>, vector<64x64xf32>
    %cst_8 = arith.constant dense<0.000000e+00> : vector<64x128xf32>
    %9 = tpu.matmul %8, %7, %cst_8 {dimension_numbers = #tpu.dot_dimension_numbers<[1], [0], [0], [1], [0, 0, 1, 1], [], []>} : vector<64x64xf32>, vector<64x128xf32>, vector<64x128xf32> -> vector<64x128xf32>
    %c0_9 = arith.constant 0 : index
    %c0_10 = arith.constant 0 : index
    %10 = vector.load %arg5[%c0_9, %c0_10] : memref<64x1xf32, #tpu.memory_space<vmem>>, vector<64x1xf32>
    %11 = vector.broadcast %10 : vector<64x1xf32> to vector<64x128xf32>
    %12 = arith.addf %9, %11 : vector<64x128xf32>
    %cst_11 = arith.constant 0.000000e+00 : f32
    %13 = vector.broadcast %cst_11 : f32 to vector<64x128xf32>
    %14 = arith.maximumf %12, %13 : vector<64x128xf32>
    %c0_12 = arith.constant 0 : index
    %c0_13 = arith.constant 0 : index
    %15 = vector.load %arg6[%c0_12, %c0_13] : memref<64x1xf32, #tpu.memory_space<vmem>>, vector<64x1xf32>
    %16 = vector.broadcast %15 : vector<64x1xf32> to vector<64x128xf32>
    %17 = arith.mulf %14, %16 : vector<64x128xf32>
    %cst_14 = arith.constant dense<0.000000e+00> : vector<128xf32>
    %18 = vector.multi_reduction <add>, %17, %cst_14 [0] : vector<64x128xf32> to vector<128xf32>
    %19 = vector.shape_cast %18 : vector<128xf32> to vector<1x128xf32>
    %c0_15 = arith.constant 0 : index
    %c0_16 = arith.constant 0 : index
    %20 = vector.load %arg7[%c0_15, %c0_16] : memref<1x1xf32, #tpu.memory_space<vmem>>, vector<1x1xf32>
    %21 = vector.broadcast %20 : vector<1x1xf32> to vector<1x128xf32>
    %22 = arith.addf %19, %21 : vector<1x128xf32>
    %c0_17 = arith.constant 0 : index
    %c0_18 = arith.constant 0 : index
    %23 = vector.load %arg8[%c0_17, %c0_18] : memref<1x128xf32, #tpu.memory_space<vmem>>, vector<1x128xf32>
    tpu.vector_store %arg8[%c0_17, %c0_18], %22 {strides = array<i32>} : memref<1x128xf32, #tpu.memory_space<vmem>>, vector<1x128xf32>,
    return
  }
  func.func @transform_0(%arg0: i32) -> (i32, i32) {
    %c0_i32 = arith.constant 0 : i32
    %c0_i32_0 = arith.constant 0 : i32
    return %c0_i32, %arg0 : i32, i32
  }
  func.func @transform_1(%arg0: i32) -> (i32, i32) {
    %c0_i32 = arith.constant 0 : i32
    %c0_i32_0 = arith.constant 0 : i32
    %c0_i32_1 = arith.constant 0 : i32
    return %c0_i32, %c0_i32_0 : i32, i32
  }
  func.func @transform_2(%arg0: i32) -> (i32, i32) {
    %c0_i32 = arith.constant 0 : i32
    %c0_i32_0 = arith.constant 0 : i32
    %c0_i32_1 = arith.constant 0 : i32
    return %c0_i32, %c0_i32_0 : i32, i32
  }
  func.func @transform_3(%arg0: i32) -> (i32, i32) {
    %c0_i32 = arith.constant 0 : i32
    %c0_i32_0 = arith.constant 0 : i32
    %c0_i32_1 = arith.constant 0 : i32
    return %c0_i32, %c0_i32_0 : i32, i32
  }
  func.func @transform_4(%arg0: i32) -> (i32, i32) {
    %c0_i32 = arith.constant 0 : i32
    %c0_i32_0 = arith.constant 0 : i32
    %c0_i32_1 = arith.constant 0 : i32
    return %c0_i32, %c0_i32_0 : i32, i32
  }
  func.func @transform_5(%arg0: i32) -> (i32, i32) {
    %c0_i32 = arith.constant 0 : i32
    %c0_i32_0 = arith.constant 0 : i32
    %c0_i32_1 = arith.constant 0 : i32
    return %c0_i32, %c0_i32_0 : i32, i32
  }
  func.func @transform_6(%arg0: i32) -> (i32, i32) {
    %c0_i32 = arith.constant 0 : i32
    %c0_i32_0 = arith.constant 0 : i32
    %c0_i32_1 = arith.constant 0 : i32
    return %c0_i32, %c0_i32_0 : i32, i32
  }
  func.func @transform_7(%arg0: i32) -> (i32, i32) {
    %c0_i32 = arith.constant 0 : i32
    %c0_i32_0 = arith.constant 0 : i32
    return %c0_i32, %arg0 : i32, i32
  }
}

</mosaic_0001>

<bundles_post_ra>
// kernel: critic_forward.1
= control target key start
LH: loop header
LB: loop body
LE: loop exit
PB: predicated region body
PF: predicated region fallthrough
CT: control target
= control target key end

     0   :  { %vm88_vm0 = vcmask 261120   ;;  %v616_v2 = vmov 0   ;;  %vm282_vm1 = vcmask 523264   ;;  %s811_s0 = inlined_call_operand.vmem [shape: f32[32,128], index: 0, kind: input, shape index: {}]   ;;  %s812_s1 = inlined_call_operand.vmem [shape: f32[64,32], index: 1, kind: input, shape index: {}]   ;;  %s813_s6 = inlined_call_operand.<no memory space> [shape: f32[1,1], index: 6, kind: input, shape index: {}]   ;;  %s814_s2 = inlined_call_operand.vmem [shape: f32[64,1], index: 2, kind: input, shape index: {}]   ;;  %s815_s4 = inlined_call_operand.vmem [shape: f32[64,1], index: 4, kind: input, shape index: {}]   ;;  %s816_s5 = inlined_call_operand.vmem [shape: f32[64,1], index: 5, kind: input, shape index: {}]   ;;  %s817_s3 = inlined_call_operand.vmem [shape: f32[64,64], index: 3, kind: input, shape index: {}]   ;;  %s818_s7 = inlined_call_operand.vmem [shape: f32[1,128], index: 7, kind: output, shape index: {}]  }
   0x1   :  { %v31_v0 = vld [vmem:[%s811_s0 + $0x18] sm:$0xff]  ;;  %v30_v1 = vld [vmem:[%s811_s0 + $0x10] sm:$0xff]  ;;  %614 = vset.pattern.permute.xlu0 %v616_v2  ;;  %615 = vset.pattern.permute.xlu1 %v616_v2  ;;  %v12_v3 = vstv %s813_s6  ;;  %v32_v4 = vld [vmem:[%s812_s1] sm:$0xff] }
   0x2   :  { %549 = vmatprep.subr.mxu0 %v31_v0  ;;  %13 = vst [vmem:[#allocation2] sm:$0x1] %v12_v3  ;;  %v29_v5 = vld [vmem:[%s811_s0 + $0x8] sm:$0xff]  ;;  %557 = vmatprep.mubr.msk.f32.mxu0 %vm88_vm0, %v32_v4  ;;  %v28_v6 = vld [vmem:[%s811_s0] sm:$0xff]  ;;  %v47_v7 = vld [vmem:[%s814_s2 + $0x38] sm:$0xff] }
   0x3   :  { %550 = vmatpush3.msra.mxu0 %v31_v0  ;;  %v45_v8 = vld [vmem:[%s814_s2 + $0x28] sm:$0xff]  ;;  %85 = vperm.xlu0 %614, %v47_v7   ;;  %v46_v10 = vld [vmem:[%s814_s2 + $0x30] sm:$0xff]  ;;  %v44_v12 = vld [vmem:[%s814_s2 + $0x20] sm:$0xff] }
   0x4   :  { %551 = vmatprep.subr.mxu0 %v30_v1  ;;  %v33_v9 = vld [vmem:[%s812_s1 + $0x8] sm:$0xff]  ;;  %75 = vperm.xlu1 %615, %v45_v8   ;;  %v34_v11 = vld [vmem:[%s812_s1 + $0x10] sm:$0xff]  ;;  %v35_v13 = vld [vmem:[%s812_s1 + $0x18] sm:$0xff] }
   0x5   :  { %552 = vmatpush3.msra.mxu0 %v30_v1  ;;  %v43_v14 = vld [vmem:[%s814_s2 + $0x18] sm:$0xff]  ;;  %v36_v15 = vld [vmem:[%s812_s1 + $0x20] sm:$0xff]  ;;  %v42_v16 = vld [vmem:[%s814_s2 + $0x10] sm:$0xff] }
   0x6   :  { %553 = vmatprep.subr.mxu0 %v29_v5  ;;  %v37_v17 = vld [vmem:[%s812_s1 + $0x28] sm:$0xff]  ;;  %v38_v19 = vld [vmem:[%s812_s1 + $0x30] sm:$0xff]  ;;  %v40_v20 = vld [vmem:[%s814_s2] sm:$0xff] }
   0x7   :  { %554 = vmatpush3.msra.mxu0 %v29_v5  ;;  %80 = vperm.xlu0 %614, %v46_v10   ;;  %v41_v18 = vld [vmem:[%s814_s2 + $0x8] sm:$0xff]  ;;  %v39_v21 = vld [vmem:[%s812_s1 + $0x38] sm:$0xff]  ;;  %v234_v22 = vld [vmem:[%s815_s4] sm:$0xff] }
   0x8   :  { %555 = vmatprep.subr.mxu0 %v28_v6  ;;  %70 = vperm.xlu1 %615, %v44_v12   ;;  %v235_v23 = vld [vmem:[%s815_s4 + $0x8] sm:$0xff]  ;;  %v236_v24 = vld [vmem:[%s815_s4 + $0x10] sm:$0xff]  ;;  %v237_v25 = vld [vmem:[%s815_s4 + $0x18] sm:$0xff] }
   0x9   :  { %556 = vmatpush3.msra.mxu0 %v28_v6  ;;  %v420_v26 = vld [vmem:[%s816_s5] sm:$0xff]  ;;  %v421_v27 = vld [vmem:[%s816_s5 + $0x8] sm:$0xff]  ;;  %v422_v29 = vld [vmem:[%s816_s5 + $0x10] sm:$0xff] }
   0xa   :  { %558 = vmatmul.mubr.msk.f32.vlgmr.msra.gmra.mxu0 %vm88_vm0, %v33_v9  ;;  %v238_v28 = vld [vmem:[%s815_s4 + $0x20] sm:$0xff]  ;;  %v239_v30 = vld [vmem:[%s815_s4 + $0x28] sm:$0xff]  ;;  %v423_v31 = vld [vmem:[%s816_s5 + $0x18] sm:$0xff] }
   0xb   :  { %560 = vmatprep.mubr.msk.f32.mxu0 %vm88_vm0, %v34_v11  ;;  %65 = vperm.xlu0 %614, %v43_v14   ;;  %v240_v32 = vld [vmem:[%s815_s4 + $0x30] sm:$0xff]  ;;  %v424_v33 = vld [vmem:[%s816_s5 + $0x20] sm:$0xff]  ;;  %v241_v34 = vld [vmem:[%s815_s4 + $0x38] sm:$0xff] }
   0xc   :  { %60 = vperm.xlu1 %615, %v42_v16   ;;  %v425_v35 = vld [vmem:[%s816_s5 + $0x28] sm:$0xff]  ;;  %v426_v36 = vld [vmem:[%s816_s5 + $0x30] sm:$0xff]  ;;  %v427_v37 = vld [vmem:[%s816_s5 + $0x38] sm:$0xff] }
   0xd   :  { %v489_v38 = vld [vmem:[#allocation2] sm:$0x1]  ;;  %v228_v40 = vld [vmem:[%s817_s3 + $0x10] sm:$0xff]  ;;  %v227_v9 = vld [vmem:[%s817_s3 + $0x8] sm:$0xff] }
   0xe   :  { %561 = vmatmul.mubr.msk.f32.gmra.mxu0 %vm88_vm0, %v35_v13  ;;  %v226_v39 = vld [vmem:[%s817_s3] sm:$0xff]  ;;  %588 = vmatprep.mubr.msk.f32.mxu1 %vm282_vm1, %v228_v40  ;;  %v229_v10 = vld [vmem:[%s817_s3 + $0x18] sm:$0xff]  ;;  %v231_v12 = vld [vmem:[%s817_s3 + $0x28] sm:$0xff] }
   0xf   :  { %563 = vmatprep.mubr.msk.f32.mxu0 %vm88_vm0, %v36_v15  ;;  %55 = vperm.xlu0 %614, %v41_v18   ;;  %v230_v11 = vld [vmem:[%s817_s3 + $0x20] sm:$0xff]  ;;  %v232_v13 = vld [vmem:[%s817_s3 + $0x30] sm:$0xff]  ;;  %v233_v14 = vld [vmem:[%s817_s3 + $0x38] sm:$0xff] }
  0x10   :  { %50 = vperm.xlu1 %615, %v40_v20  }
  0x12   :  { %564 = vmatmul.mubr.msk.f32.gmra.mxu0 %vm88_vm0, %v37_v17 }
  0x13   :  { %566 = vmatprep.mubr.msk.f32.mxu0 %vm88_vm0, %v38_v19  ;;  %244 = vperm.xlu0 %614, %v234_v22  }
  0x14   :  { %249 = vperm.xlu1 %615, %v235_v23  }
  0x16   :  { %567 = vmatmul.mubr.msk.f32.gmra.mxu0 %vm88_vm0, %v39_v21 }
  0x17   :  { %254 = vperm.xlu0 %614, %v236_v24   ;;  %585 = vmatprep.mubr.msk.f32.mxu0 %vm282_vm1, %v226_v39 }
  0x18   :  { %259 = vperm.xlu1 %615, %v237_v25  }
  0x1b   :  { %430 = vperm.xlu0 %614, %v420_v26  }
  0x1c   :  { %435 = vperm.xlu1 %615, %v421_v27  }
  0x1f   :  { %264 = vperm.xlu0 %614, %v238_v28  }
  0x20   :  { %440 = vperm.xlu1 %615, %v422_v29  }
  0x23   :  { %269 = vperm.xlu0 %614, %v239_v30  }
  0x24   :  { %445 = vperm.xlu1 %615, %v423_v31  }
  0x27   :  { %274 = vperm.xlu0 %614, %v240_v32  }
  0x28   :  { %450 = vperm.xlu1 %615, %v424_v33  }
  0x2b   :  { %279 = vperm.xlu0 %614, %v241_v34  }
  0x2c   :  { %455 = vperm.xlu1 %615, %v425_v35  }
  0x2f   :  { %460 = vperm.xlu0 %614, %v426_v36  }
  0x30   :  { %465 = vperm.xlu1 %615, %v427_v37  }
  0x33   :  { %492 = vperm.xlu0 %614, %v489_v38  }
  0x7e   :  { %v86_v43 = vpop.permute.xlu0 %85 }
  0x7f   :  { %v76_v45 = vpop.permute.xlu1 %75 }
  0x82   :  { %v81_v48 = vpop.permute.xlu0 %80 }
  0x83   :  { %v71_v50 = vpop.permute.xlu1 %70 }
  0x86   :  { %v66_v57 = vpop.permute.xlu0 %65 }
  0x87   :  { %v61_v60 = vpop.permute.xlu1 %60 }
  0x8a   :  { %v56_v1 = vpop.permute.xlu0 %55 }
  0x8b   :  { %v51_v4 = vpop.permute.xlu1 %50 }
  0x8e   :  { %v245_v15 = vpop.permute.xlu0 %244 }
  0x8f   :  { %v250_v16 = vpop.permute.xlu1 %249 }
  0x92   :  { %v255_v17 = vpop.permute.xlu0 %254 }
  0x93   :  { %v260_v18 = vpop.permute.xlu1 %259 }
  0x96   :  { %v431_v19 = vpop.permute.xlu0 %430 }
  0x97   :  { %v436_v20 = vpop.permute.xlu1 %435 }
  0x9a   :  { %v265_v21 = vpop.permute.xlu0 %264 }
  0x9b   :  { %v441_v22 = vpop.permute.xlu1 %440 }
  0x9e   :  { %v270_v23 = vpop.permute.xlu0 %269 }
  0x9f   :  { %v446_v24 = vpop.permute.xlu1 %445 }
  0xa2   :  { %v275_v34 = vpop.permute.xlu0 %274 }
  0xa3   :  { %v451_v38 = vpop.permute.xlu1 %450 }
  0xca   :  { %v559_v41 = vpop.f32.mrf.mxu0 }
  0xcb   :  { %v185_v2 = vadd.f32 %v559_v41, %v56_v1 }
  0xcc   :  { %v179_v42 = vpop.f32.mrf.mxu0 }
  0xcd   :  { %v180_v5 = vadd.f32 %v179_v42, %v51_v4  ;;  %v219_v7 = vmax.f32 %v185_v2, 0.0 }
  0xce   :  { %v562_v44 = vpop.f32.mrf.mxu0 }
  0xcf   :  { %v195_v61 = vadd.f32 %v562_v44, %v66_v57  ;;  %v218_v8 = vmax.f32 %v180_v5, 0.0  ;;  %v495_v5 = vlaneseq }
  0xd0   :  { %v189_v46 = vpop.f32.mrf.mxu0 }
  0xd1   :  { %v190_v63 = vadd.f32 %v189_v46, %v61_v60  ;;  %v221_v3 = vmax.f32 %v195_v61, 0.0 }
  0xd2   :  { %v565_v47 = vpop.f32.mrf.mxu0 }
  0xd3   :  { %v205_v54 = vadd.f32 %v565_v47, %v76_v45  ;;  %v220_v6 = vmax.f32 %v190_v63, 0.0 }
  0xd4   :  { %v199_v49 = vpop.f32.mrf.mxu0 }
  0xd5   :  { %v200_v58 = vadd.f32 %v199_v49, %v71_v50  ;;  %v223_v62 = vmax.f32 %v205_v54, 0.0  ;;  %v280_v49 = vpop.permute.xlu0 %279 }
  0xd6   :  { %v568_v51 = vpop.f32.mrf.mxu0 }
  0xd7   :  { %v215_v52 = vadd.f32 %v568_v51, %v86_v43  ;;  %v222_v0 = vmax.f32 %v200_v58, 0.0 }
  0xd8   :  { %v209_v53 = vpop.f32.mrf.mxu0 }
  0xd9   :  { %v225_v55 = vmax.f32 %v215_v52, 0.0  ;;  %v210_v56 = vadd.f32 %v209_v53, %v81_v48  ;;  %v461_v63 = vpop.permute.xlu0 %460 }
  0xdb   :  { %v224_v59 = vmax.f32 %v210_v56, 0.0  ;;  %569 = vmatprep.subr.mxu0 %v225_v55  ;;  %597 = vmatprep.subr.mxu1 %v225_v55  ;;  %v456_v56 = vpop.permute.xlu1 %455 }
  0xdc   :  { %570 = vmatpush3.msra.mxu0 %v225_v55  ;;  %605 = vmatpush3.msra.mxu1 %v225_v55 }
  0xdd   :  { %571 = vmatprep.subr.mxu0 %v224_v59  ;;  %598 = vmatprep.subr.mxu1 %v224_v59 }
  0xde   :  { %572 = vmatpush3.msra.mxu0 %v224_v59  ;;  %606 = vmatpush3.msra.mxu1 %v224_v59 }
  0xdf   :  { %573 = vmatprep.subr.mxu0 %v223_v62  ;;  %599 = vmatprep.subr.mxu1 %v223_v62  ;;  %v466_v2 = vpop.permute.xlu1 %465 }
  0xe0   :  { %574 = vmatpush3.msra.mxu0 %v223_v62  ;;  %607 = vmatpush3.msra.mxu1 %v223_v62 }
  0xe1   :  { %575 = vmatprep.subr.mxu0 %v222_v0  ;;  %600 = vmatprep.subr.mxu1 %v222_v0 }
  0xe2   :  { %576 = vmatpush3.msra.mxu0 %v222_v0  ;;  %608 = vmatpush3.msra.mxu1 %v222_v0 }
  0xe3   :  { %577 = vmatprep.subr.mxu0 %v221_v3  ;;  %601 = vmatprep.subr.mxu1 %v221_v3 }
  0xe4   :  { %578 = vmatpush3.msra.mxu0 %v221_v3  ;;  %609 = vmatpush3.msra.mxu1 %v221_v3 }
  0xe5   :  { %579 = vmatprep.subr.mxu0 %v220_v6  ;;  %602 = vmatprep.subr.mxu1 %v220_v6 }
  0xe6   :  { %580 = vmatpush3.msra.mxu0 %v220_v6  ;;  %610 = vmatpush3.msra.mxu1 %v220_v6 }
  0xe7   :  { %581 = vmatprep.subr.mxu0 %v219_v7  ;;  %603 = vmatprep.subr.mxu1 %v219_v7 }
  0xe8   :  { %582 = vmatpush3.msra.mxu0 %v219_v7  ;;  %611 = vmatpush3.msra.mxu1 %v219_v7 }
  0xe9   :  { %583 = vmatprep.subr.mxu0 %v218_v8  ;;  %604 = vmatprep.subr.mxu1 %v218_v8 }
  0xea   :  { %584 = vmatpush3.msra.mxu0 %v218_v8  ;;  %612 = vmatpush3.msra.mxu1 %v218_v8  ;;  %v496_v8 = vshrl.u32 %v495_v5, 7 }
  0xeb   :  { %586 = vmatmul.mubr.msk.f32.vlgmr.msra.gmra.mxu0 %vm282_vm1, %v227_v9  ;;  %589 = vmatmul.mubr.msk.f32.vlgmr.msra.gmra.mxu1 %vm282_vm1, %v229_v10 }
  0xec   :  { %591 = vmatprep.mubr.msk.f32.mxu1 %vm282_vm1, %v230_v11  ;;  %v497_v11 = vsub.s32 0, %v496_v8 }
  0xef   :  { %592 = vmatmul.mubr.msk.f32.gmra.mxu1 %vm282_vm1, %v231_v12 }
  0xf0   :  { %594 = vmatprep.mubr.msk.f32.mxu1 %vm282_vm1, %v232_v13  ;;  %v493_v13 = vpop.permute.xlu0 %492 }
  0xf3   :  { %595 = vmatmul.mubr.msk.f32.gmra.mxu1 %vm282_vm1, %v233_v14 }
 0x1ab   :  { %v587_v25 = vpop.f32.mrf.mxu0  ;;  %v590_v26 = vpop.f32.mrf.mxu1 }
 0x1ac   :  { %v379_v27 = vadd.f32 %v587_v25, %v250_v16  ;;  %v389_v28 = vadd.f32 %v590_v26, %v260_v18 }
 0x1ad   :  { %v373_v29 = vpop.f32.mrf.mxu0  ;;  %v383_v30 = vpop.f32.mrf.mxu1 }
 0x1ae   :  { %v413_v31 = vmax.f32 %v379_v27, 0.0  ;;  %v374_v32 = vadd.f32 %v373_v29, %v245_v15  ;;  %v384_v33 = vadd.f32 %v383_v30, %v255_v17  ;;  %v415_v39 = vmax.f32 %v389_v28, 0.0 }
 0x1af   :  { %v593_v35 = vpop.f32.mrf.mxu1  ;;  %v498_v15 = vrot.slane %v493_v13, %v497_v11 }
 0x1b0   :  { %v412_v36 = vmax.f32 %v374_v32, 0.0  ;;  %v414_v37 = vmax.f32 %v384_v33, 0.0  ;;  %v469_v41 = vmul.f32 %v436_v20, %v413_v31  ;;  %v399_v43 = vadd.f32 %v593_v35, %v270_v23 }
 0x1b1   :  { %v393_v40 = vpop.f32.mrf.mxu1  ;;  %v471_v50 = vmul.f32 %v446_v24, %v415_v39 }
 0x1b2   :  { %v468_v42 = vmul.f32 %v431_v19, %v412_v36  ;;  %v394_v44 = vadd.f32 %v393_v40, %v265_v21  ;;  %v470_v47 = vmul.f32 %v441_v22, %v414_v37  ;;  %v417_v53 = vmax.f32 %v399_v43, 0.0 }
 0x1b3   :  { %v596_v45 = vpop.f32.mrf.mxu1 }
 0x1b4   :  { %v476_v46 = vadd.f32 %v469_v41, %v468_v42  ;;  %v416_v48 = vmax.f32 %v394_v44, 0.0  ;;  %v409_v54 = vadd.f32 %v596_v45, %v280_v49  ;;  %v473_v60 = vmul.f32 %v456_v56, %v417_v53 }
 0x1b5   :  { %v403_v51 = vpop.f32.mrf.mxu1 }
 0x1b6   :  { %v477_v52 = vadd.f32 %v476_v46, %v470_v47  ;;  %v404_v55 = vadd.f32 %v403_v51, %v275_v34  ;;  %v472_v57 = vmul.f32 %v451_v38, %v416_v48  ;;  %v419_v62 = vmax.f32 %v409_v54, 0.0 }
 0x1b8   :  { %v478_v58 = vadd.f32 %v477_v52, %v471_v50  ;;  %v418_v59 = vmax.f32 %v404_v55, 0.0  ;;  %v475_v3 = vmul.f32 %v466_v2, %v419_v62 }
 0x1ba   :  { %v479_v61 = vadd.f32 %v478_v58, %v472_v57  ;;  %v474_v0 = vmul.f32 %v461_v63, %v418_v59 }
 0x1bc   :  { %v480_v1 = vadd.f32 %v479_v61, %v473_v60 }
 0x1be   :  { %v481_v4 = vadd.f32 %v480_v1, %v474_v0 }
 0x1c0   :  { %v482_v6 = vadd.f32 %v481_v4, %v475_v3 }
 0x1c2   :  { %v483_v7 = vrot.slane %v482_v6, 4 }
 0x1c4   :  { %v484_v9 = vadd.f32 %v483_v7, %v482_v6 }
 0x1c6   :  { %v485_v10 = vrot.slane %v484_v9, 2 }
 0x1c8   :  { %v486_v12 = vadd.f32 %v485_v10, %v484_v9 }
 0x1ca   :  { %v487_v14 = vrot.slane %v486_v12, 1 }
 0x1cc   :  { %v488_v16 = vadd.f32 %v487_v14, %v486_v12 }
 0x1ce   :  { %v499_v17 = vadd.f32 %v498_v15, %v488_v16 }
 0x1d0   :  { %500 = vst [vmem:[%s818_s7] sm:$0x1] %v499_v17 }

</bundles_post_ra>
